<compile_context>
chip_gen: v6e
topology: v6e:2x2x1
jax: 0.10.0
libtpu: 0.0.40
codegen_flags: <defaults>
</compile_context>

<pallas_src>
import functools

import jax
import jax.numpy as jnp
from jax.experimental import pallas as pl
from jax.experimental.pallas import tpu as pltpu


# ---------------------------------------------------------------------------
# Tiling helpers
# ---------------------------------------------------------------------------
_TILE_IO_CAP = 4 * 1024 * 1024        # per-input tile cap (review: 2-4 MiB)
_MIN_GRID_STEPS = 8                   # target grid steps for pipeline overlap
_SMALL_PROBLEM_BYTES = 1 * 1024 * 1024  # latency-bound gate for transposed path


def _round_up(n: int, m: int) -> int:
    return ((n + m - 1) // m) * m


def _round_down(n: int, m: int) -> int:
    # Round down to a multiple of m, never below m.
    return max(m, (n // m) * m)


def _sublane_multiple(dtype) -> int:
    # f32 -> 8, bf16 -> 16, int8/fp8 -> 32 (sub-32-bit packs along sublanes).
    return max(8, 32 // jnp.dtype(dtype).itemsize)


def _physical_vmem_bytes() -> int:
    """Physical VMEM per TensorCore (128 MiB v5e/v6e, 64 MiB v7x)."""
    try:
        info = pltpu.get_tpu_info()
        for name in ("vmem_capacity_bytes", "vmem_size_bytes", "vmem_bytes"):
            v = getattr(info, name, None)
            if v:
                return int(v)
    except Exception:
        pass
    # Conservative fallback sized for the smallest generation (v7x, 64 MiB).
    return 64 * 1024 * 1024


def _vmem_budgets() -> tuple[int, int]:
    phys = _physical_vmem_bytes()
    # Scoped-VMEM limit requested from Mosaic, with generous headroom below
    # the physical size (and below 64 MiB so it is safe even if get_tpu_info
    # ever reports per-chip instead of per-core capacity).
    vmem_limit = min(int(phys * 0.65), 64 * 1024 * 1024)
    # Budget for the tile working set; half the limit is left as headroom for
    # Mosaic internal scratch.
    tile_budget = vmem_limit // 2
    return vmem_limit, tile_budget


def _per_elem_vmem_bytes(itemsize: int) -> int:
    # 2x double-buffered input + 2x double-buffered output (= 4*itemsize)
    # plus ~2 tile-sized f32 in-kernel temporaries (upcast x / exp buffer).
    return 4 * itemsize + 8


def _pick_batch_tile(B, width, itemsize, sub, tile_budget):
    """Rows per block for a (rows, width) tile: bounded by the VMEM budget
    (including f32 temps), the per-input-tile I/O cap, and a >= 8-step grid."""
    by_vmem = tile_budget // (_per_elem_vmem_bytes(itemsize) * width)
    by_cap = _TILE_IO_CAP // (width * itemsize)
    by_steps = _round_up(pl.cdiv(B, _MIN_GRID_STEPS), sub)
    tile_b = _round_down(min(by_vmem, by_cap, by_steps), sub)
    return min(tile_b, _round_up(B, sub))


# ---------------------------------------------------------------------------
# Kernels
# ---------------------------------------------------------------------------
def _softmax_rows_kernel(x_ref, o_ref):
    # Block (tile_b, D): per-row stable softmax, reduction over the lane axis.
    x = x_ref[...].astype(jnp.float32)
    row_max = jnp.max(x, axis=1, keepdims=True)
    if o_ref.dtype == jnp.float32:
        # Reuse the output VMEM block as the exp() buffer: x and e are never
        # live as two separate tile-sized f32 temporaries.
        o_ref[...] = jnp.exp(x - row_max)
        e = o_ref[...]
        o_ref[...] = e / jnp.sum(e, axis=1, keepdims=True)
    else:
        e = jnp.exp(x - row_max)
        o_ref[...] = (e / jnp.sum(e, axis=1, keepdims=True)).astype(o_ref.dtype)


def _softmax_cols_kernel(x_ref, o_ref):
    # Block (D, B): batch on the lane axis, reduction over sublanes.
    x = x_ref[...].astype(jnp.float32)
    col_max = jnp.max(x, axis=0, keepdims=True)
    if o_ref.dtype == jnp.float32:
        o_ref[...] = jnp.exp(x - col_max)
        e = o_ref[...]
        o_ref[...] = e / jnp.sum(e, axis=0, keepdims=True)
    else:
        e = jnp.exp(x - col_max)
        o_ref[...] = (e / jnp.sum(e, axis=0, keepdims=True)).astype(o_ref.dtype)


def _softmax_stats_kernel(x_ref, max_ref, inv_ref, *, d_total, tile_d):
    # Wide-D pass 1: running row-max / row-sum-exp in (tile_b, 1) accumulators
    # resident across the "arbitrary" feature axis.  The last feature step
    # converts the sum to 1/sum so pass 2 needs no per-block reciprocal.
    j = pl.program_id(1)

    @pl.when(j == 0)
    def _():
        max_ref[...] = jnp.full(max_ref.shape, -jnp.inf, jnp.float32)
        inv_ref[...] = jnp.zeros(inv_ref.shape, jnp.float32)

    x = x_ref[...].astype(jnp.float32)
    # Mask out-of-range columns of a partial last D block so padding garbage
    # cannot pollute the row reduction.
    col = jax.lax.broadcasted_iota(jnp.int32, x.shape, 1) + j * tile_d
    x = jnp.where(col < d_total, x, -jnp.inf)

    m_prev = max_ref[...]
    m_new = jnp.maximum(m_prev, jnp.max(x, axis=1, keepdims=True))
    inv_ref[...] = (inv_ref[...] * jnp.exp(m_prev - m_new)
                    + jnp.sum(jnp.exp(x - m_new), axis=1, keepdims=True))
    max_ref[...] = m_new

    @pl.when(j == pl.num_programs(1) - 1)
    def _():
        inv_ref[...] = 1.0 / inv_ref[...]


def _softmax_norm_kernel(x_ref, max_ref, inv_ref, o_ref):
    # Wide-D pass 2: elementwise exp(x - max) * inv_sum.
    x = x_ref[...].astype(jnp.float32)
    o_ref[...] = (jnp.exp(x - max_ref[...]) * inv_ref[...]).astype(o_ref.dtype)


# ---------------------------------------------------------------------------
# pallas_call wrappers for the three paths
# ---------------------------------------------------------------------------
def _softmax_rows(x, tile_b, vmem_limit):
    B, D = x.shape
    itemsize = jnp.dtype(x.dtype).itemsize
    return pl.pallas_call(
        _softmax_rows_kernel,
        out_shape=jax.ShapeDtypeStruct((B, D), x.dtype),
        grid_spec=pltpu.PrefetchScalarGridSpec(
            num_scalar_prefetch=0,
            grid=(pl.cdiv(B, tile_b),),
            in_specs=[pl.BlockSpec((tile_b, D), lambda i: (i, 0))],
            out_specs=pl.BlockSpec((tile_b, D), lambda i: (i, 0)),
        ),
        compiler_params=pltpu.CompilerParams(
            dimension_semantics=("parallel",),
            vmem_limit_bytes=vmem_limit,
        ),
        cost_estimate=pl.CostEstimate(
            flops=5 * B * D, transcendentals=B * D,
            bytes_accessed=2 * B * D * itemsize),
    )(x)


def _softmax_cols(xt, vmem_limit):
    # Single-block lane-dense path; only used when the whole problem is tiny
    # (latency-bound), so one full (D, B) block easily fits VMEM.
    D, B = xt.shape
    itemsize = jnp.dtype(xt.dtype).itemsize
    return pl.pallas_call(
        _softmax_cols_kernel,
        out_shape=jax.ShapeDtypeStruct((D, B), xt.dtype),
        grid_spec=pltpu.PrefetchScalarGridSpec(
            num_scalar_prefetch=0,
            grid=(1,),
            in_specs=[pl.BlockSpec((D, B), lambda i: (0, 0))],
            out_specs=pl.BlockSpec((D, B), lambda i: (0, 0)),
        ),
        compiler_params=pltpu.CompilerParams(
            dimension_semantics=("arbitrary",),
            vmem_limit_bytes=vmem_limit,
        ),
        cost_estimate=pl.CostEstimate(
            flops=5 * B * D, transcendentals=B * D,
            bytes_accessed=2 * B * D * itemsize),
    )(xt)


def _softmax_wide(x, tile_b, tile_d, vmem_limit):
    B, D = x.shape
    itemsize = jnp.dtype(x.dtype).itemsize
    grid = (pl.cdiv(B, tile_b), pl.cdiv(D, tile_d))

    row_max, row_inv = pl.pallas_call(
        functools.partial(_softmax_stats_kernel, d_total=D, tile_d=tile_d),
        out_shape=(jax.ShapeDtypeStruct((B, 1), jnp.float32),
                   jax.ShapeDtypeStruct((B, 1), jnp.float32)),
        grid_spec=pltpu.PrefetchScalarGridSpec(
            num_scalar_prefetch=0,
            grid=grid,
            in_specs=[pl.BlockSpec((tile_b, tile_d), lambda i, j: (i, j))],
            out_specs=[pl.BlockSpec((tile_b, 1), lambda i, j: (i, 0)),
                       pl.BlockSpec((tile_b, 1), lambda i, j: (i, 0))],
        ),
        compiler_params=pltpu.CompilerParams(
            dimension_semantics=("parallel", "arbitrary"),
            vmem_limit_bytes=vmem_limit,
        ),
        cost_estimate=pl.CostEstimate(
            flops=4 * B * D, transcendentals=B * D,
            bytes_accessed=B * D * itemsize + 8 * B),
    )(x)

    return pl.pallas_call(
        _softmax_norm_kernel,
        out_shape=jax.ShapeDtypeStruct((B, D), x.dtype),
        grid_spec=pltpu.PrefetchScalarGridSpec(
            num_scalar_prefetch=0,
            grid=grid,
            in_specs=[pl.BlockSpec((tile_b, tile_d), lambda i, j: (i, j)),
                      pl.BlockSpec((tile_b, 1), lambda i, j: (i, 0)),
                      pl.BlockSpec((tile_b, 1), lambda i, j: (i, 0))],
            out_specs=pl.BlockSpec((tile_b, tile_d), lambda i, j: (i, j)),
        ),
        compiler_params=pltpu.CompilerParams(
            dimension_semantics=("parallel", "parallel"),
            vmem_limit_bytes=vmem_limit,
        ),
        cost_estimate=pl.CostEstimate(
            flops=3 * B * D, transcendentals=B * D,
            bytes_accessed=2 * B * D * itemsize + 8 * B),
    )(x, row_max, row_inv)


# ---------------------------------------------------------------------------
# Public entry point (matches DiySoftMax.forward on a 2-D (batch, C) tensor)
# ---------------------------------------------------------------------------
def diy_softmax(x: jax.Array, *, tile_rows: int | None = None,
                tile_cols: int | None = None) -> jax.Array:
    """Numerically-stable softmax over axis=1 of a 2-D (batch, features) array."""
    assert x.ndim == 2, "expected (batch, features)"
    B, D = x.shape
    itemsize = jnp.dtype(x.dtype).itemsize
    sub = _sublane_multiple(x.dtype)        # 8 (f32) / 16 (bf16) / 32 (int8)
    vmem_limit, tile_budget = _vmem_budgets()

    # VMEM bytes per batch row of a full-row tile, INCLUDING in-kernel f32
    # temporaries (upcast x / exp buffer), not just the double-buffered I/O.
    per_row_vmem = _per_elem_vmem_bytes(itemsize) * D

    force_wide = tile_cols is not None and tile_cols < D
    need_wide = force_wide or (sub * per_row_vmem > tile_budget)

    if need_wide:
        # ---- wide-D two-pass path: split the feature axis across the grid.
        # (3x minimum HBM traffic + double exp, so only entered when a full
        # row tile cannot fit the VMEM budget or the caller forces it.)
        if tile_cols is not None:
            tile_d = max(128, _round_down(tile_cols, 128))
        else:
            tile_d = 2048
        tile_d = min(tile_d, _round_up(D, 128))
        tile_b = _pick_batch_tile(B, tile_d, itemsize, sub, tile_budget)
        return _softmax_wide(x, tile_b, tile_d, vmem_limit)

    if D < 128 and B * D * itemsize <= _SMALL_PROBLEM_BYTES:
        # ---- tiny, latency-bound problem: put batch on lanes / features on
        # sublanes so the reduction runs over sublanes and the store is not a
        # lane-masked sliver.  The wrapper transposes are negligible at this
        # size.  Large-B small-D inputs deliberately fall through to the row
        # path instead: two extra full HBM transpose passes would triple the
        # traffic of a memory-bound op.
        # TODO(synk): for D | 128 and large B, a free (B,D)->(B*D/128,128)
        # reshape + segmented reduction (MXU block-diag sum, roll max tree)
        # would avoid both the transpose and the masked stores.
        return _softmax_cols(x.T, vmem_limit).T

    # ---- standard row path: (tile_b, D) blocks, reduce over the lane axis.
    if tile_rows is not None:
        tile_b = min(max(sub, _round_down(tile_rows, sub)), _round_up(B, sub))
    else:
        tile_b = _pick_batch_tile(B, D, itemsize, sub, tile_budget)
    return _softmax_rows(x, tile_b, vmem_limit)


# ---------------------------------------------------------------------------
# Self-test
# ---------------------------------------------------------------------------
if __name__ == "__main__":
    key = jax.random.PRNGKey(0)

    def ref_softmax(a):
        e = jnp.exp(a - jnp.max(a, axis=1, keepdims=True))
        return e / jnp.sum(e, axis=1, keepdims=True)

    def check(out, a, name):
        ref = ref_softmax(a.astype(jnp.float32)).astype(a.dtype)
        assert out.shape == a.shape and out.dtype == a.dtype, name
        assert jnp.allclose(out.astype(jnp.float32), ref.astype(jnp.float32),
                            atol=1e-5, rtol=1e-5), name
        assert jnp.allclose(jnp.sum(out.astype(jnp.float32), axis=1), 1.0,
                            atol=1e-5), name

    # Primary shape consistent with the module's use (small classifier head):
    # exercises the tiny lane-dense path.
    B, D = 8, 32
    x = jax.random.normal(key, (B, D), dtype=jnp.float32)
    out = jax.block_until_ready(diy_softmax(x))
    check(out, x, "small-D lane-dense path")

    # Standard row path with a multi-step grid (pipeline overlap / megacore).
    k1, k2 = jax.random.split(key)
    x2 = jax.random.normal(k1, (256, 256), dtype=jnp.float32)
    out2 = jax.block_until_ready(diy_softmax(x2))
    check(out2, x2, "row path")

    # Wide-D two-pass path (forced via tile_cols) with a partial last D block.
    x3 = jax.random.normal(k2, (24, 400), dtype=jnp.float32)
    out3 = jax.block_until_ready(diy_softmax(x3, tile_cols=128))
    check(out3, x3, "wide-D two-pass path")

    print("KERNEL_OK")
</pallas_src>

<mosaic_0001>
module attributes {stable_mosaic.version = 11 : i64} {
  func.func @_softmax_cols_kernel(%arg0: i32, %arg1: memref<32x8xf32, #tpu.memory_space<vmem>>, %arg2: memref<32x8xf32, #tpu.memory_space<vmem>>) attributes {dimension_semantics = [#tpu.dimension_semantics<arbitrary>], iteration_bounds = array<i64: 1>, scalar_prefetch = 0 : i64, scratch_operands = 0 : i64, tpu.core_type = #tpu.core_type<tc>, window_params = [{pipeline_mode = #tpu.pipeline_mode<synchronous>, transform_indices = @transform_0, window_bounds = array<i64: 32, 8>}, {pipeline_mode = #tpu.pipeline_mode<synchronous>, transform_indices = @transform_1, window_bounds = array<i64: 32, 8>}]} {
    %c0 = arith.constant 0 : index
    %c0_0 = arith.constant 0 : index
    %0 = vector.load %arg1[%c0, %c0_0] : memref<32x8xf32, #tpu.memory_space<vmem>>, vector<32x8xf32>
    %cst = arith.constant dense<0xFF800000> : vector<8xf32>
    %1 = vector.multi_reduction <maximumf>, %0, %cst [0] : vector<32x8xf32> to vector<8xf32>
    %2 = vector.shape_cast %1 : vector<8xf32> to vector<1x8xf32>
    %3 = vector.broadcast %2 : vector<1x8xf32> to vector<32x8xf32>
    %4 = arith.subf %0, %3 : vector<32x8xf32>
    %5 = math.exp %4 : vector<32x8xf32>
    %c0_1 = arith.constant 0 : index
    %c0_2 = arith.constant 0 : index
    %6 = vector.load %arg2[%c0_1, %c0_2] : memref<32x8xf32, #tpu.memory_space<vmem>>, vector<32x8xf32>
    tpu.vector_store %arg2[%c0_1, %c0_2], %5 {strides = array<i32>} : memref<32x8xf32, #tpu.memory_space<vmem>>, vector<32x8xf32>,
    %c0_3 = arith.constant 0 : index
    %c0_4 = arith.constant 0 : index
    %7 = vector.load %arg2[%c0_3, %c0_4] : memref<32x8xf32, #tpu.memory_space<vmem>>, vector<32x8xf32>
    %cst_5 = arith.constant dense<0.000000e+00> : vector<8xf32>
    %8 = vector.multi_reduction <add>, %7, %cst_5 [0] : vector<32x8xf32> to vector<8xf32>
    %9 = vector.shape_cast %8 : vector<8xf32> to vector<1x8xf32>
    %10 = vector.broadcast %9 : vector<1x8xf32> to vector<32x8xf32>
    %11 = arith.divf %7, %10 : vector<32x8xf32>
    %c0_6 = arith.constant 0 : index
    %c0_7 = arith.constant 0 : index
    %12 = vector.load %arg2[%c0_6, %c0_7] : memref<32x8xf32, #tpu.memory_space<vmem>>, vector<32x8xf32>
    tpu.vector_store %arg2[%c0_6, %c0_7], %11 {strides = array<i32>} : memref<32x8xf32, #tpu.memory_space<vmem>>, vector<32x8xf32>,
    return
  }
  func.func @transform_0(%arg0: i32) -> (i32, i32) {
    %c0_i32 = arith.constant 0 : i32
    %c0_i32_0 = arith.constant 0 : i32
    %c0_i32_1 = arith.constant 0 : i32
    return %c0_i32, %c0_i32_0 : i32, i32
  }
  func.func @transform_1(%arg0: i32) -> (i32, i32) {
    %c0_i32 = arith.constant 0 : i32
    %c0_i32_0 = arith.constant 0 : i32
    %c0_i32_1 = arith.constant 0 : i32
    return %c0_i32, %c0_i32_0 : i32, i32
  }
}

</mosaic_0001>

<bundles_post_ra>
// kernel: tpu_custom_call.1
= control target key start
LH: loop header
LB: loop body
LE: loop exit
PB: predicated region body
PF: predicated region fallthrough
CT: control target
= control target key end

     0   :  { %vm12_vm0 = vcmask 64512   ;;  %s156_s0 = inlined_call_operand.vmem [shape: f32[32,8], index: 0, kind: input, shape index: {}]   ;;  %s157_s1 = inlined_call_operand.vmem [shape: f32[32,8], index: 1, kind: output, shape index: {}]  }
   0x1   :  { %v8_v0 = vld [vmem:[%s156_s0] sm:$0xff]  ;;  %v9_v1 = vld [vmem:[%s156_s0 + $0x8] sm:$0xff]  ;;  %v10_v2 = vld [vmem:[%s156_s0 + $0x10] sm:$0xff] }
   0x2   :  { %v11_v3 = vld [vmem:[%s156_s0 + $0x18] sm:$0xff]  ;;  %v13_v4 = vsel %vm12_vm0, %v8_v0, -inf  ;;  %v14_v5 = vsel %vm12_vm0, %v9_v1, -inf  ;;  %v15_v6 = vsel %vm12_vm0, %v10_v2, -inf }
   0x3   :  { %v16_v7 = vsel %vm12_vm0, %v11_v3, -inf  ;;  %v17_v8 = vmax.f32 %v13_v4, %v14_v5 }
   0x4   :  { %v18_v9 = vmax.f32 %v15_v6, %v16_v7 }
   0x6   :  { %v19_v10 = vmax.f32 %v17_v8, %v18_v9 }
   0x8   :  { %v20_v11 = vrot.slane %v19_v10, 4 }
   0xa   :  { %v21_v12 = vmax.f32 %v19_v10, %v20_v11 }
   0xc   :  { %v22_v13 = vrot.slane %v21_v12, 2 }
   0xe   :  { %v23_v14 = vmax.f32 %v21_v12, %v22_v13 }
  0x10   :  { %v24_v15 = vrot.slane %v23_v14, 1 }
  0x12   :  { %v25_v16 = vmax.f32 %v23_v14, %v24_v15 }
  0x14   :  { %v26_v17 = vsub.f32 %v8_v0, %v25_v16  ;;  %v27_v18 = vsub.f32 %v9_v1, %v25_v16  ;;  %v28_v19 = vsub.f32 %v10_v2, %v25_v16  ;;  %v29_v20 = vsub.f32 %v11_v3, %v25_v16 }
  0x16   :  { %v30_v21 = vmul.f32 1.442695, %v26_v17  ;;  %v32_v22 = vmul.f32 1.442695, %v27_v18  ;;  %v34_v23 = vmul.f32 1.442695, %v28_v19 }
  0x17   :  { %v36_v24 = vmul.f32 1.442695, %v29_v20 }
  0x18   :  { %72 = vpow2.f32 %v30_v21 }
  0x19   :  { %74 = vpow2.f32 %v32_v22 }
  0x1a   :  { %76 = vpow2.f32 %v34_v23 }
  0x1b   :  { %78 = vpow2.f32 %v36_v24 }
  0x25   :  { %v73_v25 = vpop.eup %72 }
  0x26   :  { %v75_v26 = vpop.eup %74  ;;  %38 = vst.msk [vmem:[%s157_s1] sm:$0xff] %vm12_vm0, %v73_v25 }
  0x27   :  { %v77_v27 = vpop.eup %76  ;;  %39 = vst.msk [vmem:[%s157_s1 + $0x8] sm:$0xff] %vm12_vm0, %v75_v26 }
  0x28   :  { %v79_v28 = vpop.eup %78  ;;  %40 = vst.msk [vmem:[%s157_s1 + $0x10] sm:$0xff] %vm12_vm0, %v77_v27 }
  0x29   :  { %41 = vst.msk [vmem:[%s157_s1 + $0x18] sm:$0xff] %vm12_vm0, %v79_v28 }
  0x2d   :  { %v42_v29 = vld [vmem:[%s157_s1] sm:$0xff] }
  0x2e   :  { %v43_v30 = vld [vmem:[%s157_s1 + $0x8] sm:$0xff]  ;;  %v46_v31 = vsel %vm12_vm0, %v42_v29, 0.0 }
  0x2f   :  { %v44_v32 = vld [vmem:[%s157_s1 + $0x10] sm:$0xff]  ;;  %v47_v33 = vsel %vm12_vm0, %v43_v30, 0.0 }
  0x30   :  { %v45_v34 = vld [vmem:[%s157_s1 + $0x18] sm:$0xff]  ;;  %v48_v35 = vadd.f32 %v47_v33, %v46_v31  ;;  %v49_v36 = vsel %vm12_vm0, %v44_v32, 0.0 }
  0x31   :  { %v51_v37 = vsel %vm12_vm0, %v45_v34, 0.0 }
  0x32   :  { %v50_v38 = vadd.f32 %v49_v36, %v48_v35 }
  0x34   :  { %v52_v39 = vadd.f32 %v51_v37, %v50_v38 }
  0x36   :  { %v53_v40 = vrot.slane %v52_v39, 4 }
  0x38   :  { %v54_v41 = vadd.f32 %v53_v40, %v52_v39 }
  0x3a   :  { %v55_v42 = vrot.slane %v54_v41, 2 }
  0x3c   :  { %v56_v43 = vadd.f32 %v55_v42, %v54_v41 }
  0x3e   :  { %v57_v44 = vrot.slane %v56_v43, 1 }
  0x40   :  { %v58_v45 = vadd.f32 %v57_v44, %v56_v43 }
  0x42   :  { %80 = vrcp.f32 %v58_v45 }
  0x4f   :  { %v81_v46 = vpop.eup %80 }
  0x50   :  { %v60_v47 = vmul.f32 %v81_v46, %v42_v29  ;;  %v61_v48 = vmul.f32 %v81_v46, %v43_v30  ;;  %v62_v49 = vmul.f32 %v81_v46, %v44_v32  ;;  %v63_v50 = vmul.f32 %v81_v46, %v45_v34 }
  0x52   :  { %64 = vst.msk [vmem:[%s157_s1] sm:$0xff] %vm12_vm0, %v60_v47  ;;  %65 = vst.msk [vmem:[%s157_s1 + $0x8] sm:$0xff] %vm12_vm0, %v61_v48 }
  0x53   :  { %66 = vst.msk [vmem:[%s157_s1 + $0x10] sm:$0xff] %vm12_vm0, %v62_v49  ;;  %67 = vst.msk [vmem:[%s157_s1 + $0x18] sm:$0xff] %vm12_vm0, %v63_v50 }

</bundles_post_ra>
